<compile_context>
chip_gen: v7x
topology: tpu7x:2x2x1
jax: 0.10.0
libtpu: 0.0.40
codegen_flags: <defaults>
</compile_context>

<pallas_src>
import math

import jax
import jax.numpy as jnp
from jax.experimental import pallas as pl
from jax.experimental.pallas import tpu as pltpu


def _sinpos_kernel(pos_ref, mask_ref, fp_ref, out_ref):
    """out[t, :] = mask[t] * sin(pos[t] * inv_freq_tiled + phase)."""
    pos = pos_ref[...]             # (T_tile, 1) float32 positions
    mask = mask_ref[...]           # (T_tile, 1) float32 (0 for padding tokens)
    inv_freq = fp_ref[0:1, :]      # (1, D) inv_freq tiled over both halves
    phase = fp_ref[1:2, :]         # (1, D) 0 for sin half, pi/2 for cos half
    ang = pos * inv_freq + phase   # (T_tile, D)
    out_ref[...] = (mask * jnp.sin(ang)).astype(out_ref.dtype)


def sinusoidal_positional_embedding(input_ids: jax.Array, *, embedding_dim: int,
                                    padding_idx: int,
                                    token_tile: int = 512) -> jax.Array:
    """Forward pass of fairseq SinusoidalPositionalEmbedding (non-incremental)."""
    assert embedding_dim % 2 == 0, "only even embedding_dim supported"
    assert embedding_dim >= 4, "embedding_dim must be >= 4 (half_dim - 1 divisor)"
    # TODO(synk): odd embedding_dim (extra zero column) and the incremental_state
    # decode path are not implemented.
    bsz, seq_len = input_ids.shape
    half = embedding_dim // 2

    # make_positions: tiny mem-bound op, done in the wrapper (XLA handles it fine).
    ids = input_ids.astype(jnp.int32)
    mask_i = (ids != padding_idx).astype(jnp.int32)
    positions = jnp.cumsum(mask_i, axis=1) * mask_i + padding_idx      # (B, S)

    # Flatten to token-major and pad token count to a multiple of the tile.
    n_tokens = bsz * seq_len
    t_tile = min(token_tile, max(8, ((n_tokens + 7) // 8) * 8))
    n_pad = pl.cdiv(n_tokens, t_tile) * t_tile
    pad = n_pad - n_tokens

    pos_f = jnp.pad(positions.reshape(n_tokens).astype(jnp.float32),
                    (0, pad)).reshape(n_pad, 1)
    mask_f = jnp.pad(mask_i.reshape(n_tokens).astype(jnp.float32),
                     (0, pad)).reshape(n_pad, 1)

    # Hoisted constants: inv_freq tiled twice + phase column (cos(x) = sin(x+pi/2)).
    scale = math.log(10000.0) / (half - 1)
    inv_freq = jnp.exp(jnp.arange(half, dtype=jnp.float32) * -scale)   # (half,)
    inv_freq_tiled = jnp.concatenate([inv_freq, inv_freq])             # (D,)
    phase = jnp.concatenate([jnp.zeros((half,), jnp.float32),
                             jnp.full((half,), math.pi / 2.0, jnp.float32)])
    freq_phase = jnp.stack([inv_freq_tiled, phase], axis=0)            # (2, D)

    grid = (n_pad // t_tile,)
    out = pl.pallas_call(
        _sinpos_kernel,
        out_shape=jax.ShapeDtypeStruct((n_pad, embedding_dim), jnp.float32),
        grid=grid,
        in_specs=[
            pl.BlockSpec((t_tile, 1), lambda i: (i, 0)),               # positions
            pl.BlockSpec((t_tile, 1), lambda i: (i, 0)),               # mask
            pl.BlockSpec((2, embedding_dim), lambda i: (0, 0)),        # freq/phase
        ],
        out_specs=pl.BlockSpec((t_tile, embedding_dim), lambda i: (i, 0)),
        compiler_params=pltpu.CompilerParams(
            dimension_semantics=("parallel",)),
    )(pos_f, mask_f, freq_phase)

    return out[:n_tokens].reshape(bsz, seq_len, embedding_dim)


def _reference_forward(input_ids, *, embedding_dim, padding_idx):
    """Pure-JAX reference mirroring the PyTorch module exactly (table + gather)."""
    bsz, seq_len = input_ids.shape
    num_embeddings = padding_idx + 1 + seq_len
    half = embedding_dim // 2
    scale = math.log(10000.0) / (half - 1)
    inv_freq = jnp.exp(jnp.arange(half, dtype=jnp.float32) * -scale)
    pos = jnp.arange(num_embeddings, dtype=jnp.float32)[:, None] * inv_freq[None, :]
    table = jnp.concatenate([jnp.sin(pos), jnp.cos(pos)], axis=1)
    table = table.at[padding_idx].set(0.0)
    mask = (input_ids != padding_idx).astype(jnp.int32)
    positions = jnp.cumsum(mask, axis=1) * mask + padding_idx
    return table[positions.reshape(-1)].reshape(bsz, seq_len, embedding_dim)


if __name__ == "__main__":
    embedding_dim = 128
    padding_idx = 1
    bsz, seq_len = 2, 8

    key = jax.random.PRNGKey(0)
    # token ids in [2, 50); force a few padding tokens at the end of each row.
    ids = jax.random.randint(key, (bsz, seq_len), 2, 50, dtype=jnp.int32)
    ids = ids.at[0, -2:].set(padding_idx)
    ids = ids.at[1, -1:].set(padding_idx)

    out = sinusoidal_positional_embedding(
        ids, embedding_dim=embedding_dim, padding_idx=padding_idx)
    out = jax.block_until_ready(out)

    ref = _reference_forward(ids, embedding_dim=embedding_dim, padding_idx=padding_idx)
    assert out.shape == (bsz, seq_len, embedding_dim)
    assert jnp.allclose(out, ref, atol=1e-5, rtol=1e-5), "mismatch vs reference"

    print("KERNEL_OK")
</pallas_src>

<mosaic_0001>
module attributes {stable_mosaic.version = 11 : i64} {
  func.func @_sinpos_kernel(%arg0: i32, %arg1: memref<16x1xf32, #tpu.memory_space<vmem>>, %arg2: memref<16x1xf32, #tpu.memory_space<vmem>>, %arg3: memref<2x128xf32, #tpu.memory_space<vmem>>, %arg4: memref<16x128xf32, #tpu.memory_space<vmem>>) attributes {dimension_semantics = [#tpu.dimension_semantics<parallel>], iteration_bounds = array<i64: 1>, scalar_prefetch = 0 : i64, scratch_operands = 0 : i64, tpu.core_type = #tpu.core_type<tc>, window_params = [{transform_indices = @transform_0, window_bounds = array<i64: 16, 1>}, {transform_indices = @transform_1, window_bounds = array<i64: 16, 1>}, {pipeline_mode = #tpu.pipeline_mode<synchronous>, transform_indices = @transform_2, window_bounds = array<i64: 2, 128>}, {transform_indices = @transform_3, window_bounds = array<i64: 16, 128>}]} {
    %c0 = arith.constant 0 : index
    %c0_0 = arith.constant 0 : index
    %0 = vector.load %arg1[%c0, %c0_0] : memref<16x1xf32, #tpu.memory_space<vmem>>, vector<16x1xf32>
    %c0_1 = arith.constant 0 : index
    %c0_2 = arith.constant 0 : index
    %1 = vector.load %arg2[%c0_1, %c0_2] : memref<16x1xf32, #tpu.memory_space<vmem>>, vector<16x1xf32>
    %c0_3 = arith.constant 0 : index
    %c0_4 = arith.constant 0 : index
    %2 = vector.load %arg3[%c0_3, %c0_4] : memref<2x128xf32, #tpu.memory_space<vmem>>, vector<1x128xf32>
    %c1 = arith.constant 1 : index
    %c0_5 = arith.constant 0 : index
    %3 = vector.load %arg3[%c1, %c0_5] : memref<2x128xf32, #tpu.memory_space<vmem>>, vector<1x128xf32>
    %4 = vector.broadcast %0 : vector<16x1xf32> to vector<16x128xf32>
    %5 = vector.broadcast %2 : vector<1x128xf32> to vector<16x128xf32>
    %6 = arith.mulf %4, %5 : vector<16x128xf32>
    %7 = vector.broadcast %3 : vector<1x128xf32> to vector<16x128xf32>
    %8 = arith.addf %6, %7 : vector<16x128xf32>
    %9 = math.sin %8 : vector<16x128xf32>
    %10 = vector.broadcast %1 : vector<16x1xf32> to vector<16x128xf32>
    %11 = arith.mulf %10, %9 : vector<16x128xf32>
    %c0_6 = arith.constant 0 : index
    %c0_7 = arith.constant 0 : index
    %12 = vector.load %arg4[%c0_6, %c0_7] : memref<16x128xf32, #tpu.memory_space<vmem>>, vector<16x128xf32>
    tpu.vector_store %arg4[%c0_6, %c0_7], %11 {strides = array<i32>} : memref<16x128xf32, #tpu.memory_space<vmem>>, vector<16x128xf32>,
    return
  }
  func.func @transform_0(%arg0: i32) -> (i32, i32) {
    %c0_i32 = arith.constant 0 : i32
    %c0_i32_0 = arith.constant 0 : i32
    return %arg0, %c0_i32 : i32, i32
  }
  func.func @transform_1(%arg0: i32) -> (i32, i32) {
    %c0_i32 = arith.constant 0 : i32
    %c0_i32_0 = arith.constant 0 : i32
    return %arg0, %c0_i32 : i32, i32
  }
  func.func @transform_2(%arg0: i32) -> (i32, i32) {
    %c0_i32 = arith.constant 0 : i32
    %c0_i32_0 = arith.constant 0 : i32
    %c0_i32_1 = arith.constant 0 : i32
    return %c0_i32, %c0_i32_0 : i32, i32
  }
  func.func @transform_3(%arg0: i32) -> (i32, i32) {
    %c0_i32 = arith.constant 0 : i32
    %c0_i32_0 = arith.constant 0 : i32
    return %arg0, %c0_i32 : i32, i32
  }
}

</mosaic_0001>

<bundles_post_ra>
// kernel: tpu_custom_call.1
= control target key start
LH: loop header
LB: loop body
LE: loop exit
PB: predicated region body
PF: predicated region fallthrough
CT: control target
= control target key end

     0   :  { %v343_v2 = vmov 0   ;;  %s492_s0 = inlined_call_operand.vmem [shape: f32[16,1], index: 0, kind: input, shape index: {}]   ;;  %s493_s1 = inlined_call_operand.vmem [shape: f32[16,1], index: 1, kind: input, shape index: {}]   ;;  %s494_s2 = inlined_call_operand.vmem [shape: f32[2,128], index: 2, kind: input, shape index: {}]   ;;  %s495_s3 = inlined_call_operand.hbm [shape: f32[16,128], index: 3, kind: output, shape index: {}]  }
   0x1   :  { %v15_v0 = vld [vmem:[%s492_s0] sm:$0xff]  ;;  %309 = vset.pattern.permute.xlu0 %v343_v2  ;;  %310 = vset.pattern.permute.xlu1 %v343_v2 }
   0x2   :  { %v17_v1 = vld [vmem:[%s493_s1] sm:$0xff]  ;;  %23 = vperm.xlu0 %309, %v15_v0  }
   0x3   :  { %253 = vperm.xlu1 %310, %v17_v1  }
   0x4   :  { %8 = vsyncpa [#allocation3], 0  ;;  %v16_v3 = vld [vmem:[%s492_s0 + $0x8] sm:$0xff]  ;;  %v281_v5 = vld [vmem:[%s494_s2] ss:$0 sm:$0xff]  ;;  %s350_s0 = smov [#allocation2]  }
   0x5   :  { %v18_v4 = vld [vmem:[%s493_s1 + $0x8] sm:$0xff]  ;;  %v282_v6 = vld [vmem:[%s494_s2 + $0x1] ss:$0 sm:$0xff]  ;;  %v344_v31 = vmov 2102212464   ;;  %s270_s1 = sshll.u32 %s350_s0, 4  ;;  %s271_s1 = int_to_ptr.vmem [resolvable:$true] %s270_s1 }
   0x6   :  { %28 = vperm.xlu0 %309, %v16_v3   ;;  %v345_v33 = vmov 920167782   ;;  %v346_v37 = vmov 1326507024   ;;  %v347_v41 = vmov 683565275   ;;  %p324_p1 = scmp.lt.s32.totalorder %s271_s1, %s271_s1 }
   0x7   :  { %258 = vperm.xlu1 %310, %v18_v4   ;;  %v348_v43 = vmov 2475754826   ;;  %v349_v45 = vmov 2131351028   ;;  %s319_s2 = scalar_lea.vmem %s271_s1, 256 }
   0x8   :  { %p320_p0 = scmp.ne.s32.totalorder %s271_s1, %s319_s2  ;;  %p325_p2 = scmp.lt.s32.totalorder %s319_s2, %s319_s2 }
   0xa   :  { %p326_p3 = por %p325_p2, %p324_p1 }
   0xc   :  { %p327_p4 = pnand %p326_p3, %p320_p0 }
  0x81   :  { %v24_v7 = vpop.permute.xlu0 %23 }
  0x82   :  { %v35_v8 = vmul.f32 %v281_v5, %v24_v7 }
  0x84   :  { %v391_v9 = vadd.f32 %v282_v6, %v35_v8 }
  0x85   :  { %v29_v10 = vpop.permute.xlu0 %28 }
  0x86   :  { %v46_v11 = vand.u32 2139095040, %v391_v9  ;;  %v36_v12 = vmul.f32 %v281_v5, %v29_v10  ;;  %v43_v13 = vand.u32 2147483647, %v391_v9  ;;  %vm45_vm14 = vcmp.lt.s32.totalorder %v391_v9, 0 }
  0x88   :  { %v47_v14 = vshrl.u32 %v46_v11, 23  ;;  %v395_v15 = vadd.f32 %v282_v6, %v36_v12  ;;  %v50_v18 = vand.u32 8388607, %v43_v13  ;;  %vm44_vm15 = vcmp.le.f32.partialorder %v43_v13, 0.7853982 }
  0x8a   :  { %v283_v16 = vadd.s32 4294967169, %v47_v14  ;;  %v150_v17 = vand.u32 2139095040, %v395_v15  ;;  %v147_v19 = vand.u32 2147483647, %v395_v15  ;;  %v51_v23 = vor.u32 8388608, %v50_v18 }
  0x8c   :  { %v53_v20 = vadd.s32 1, %v283_v16  ;;  %v151_v21 = vshrl.u32 %v150_v17, 23  ;;  %v403_v25 = vand.u32 8388607, %v147_v19  ;;  %v405_v30 = vshll.u32 %v51_v23, 8 }
  0x8e   :  { %vm54_vm0 = vcmp.gt.s32.totalorder %v53_v20, 0  ;;  %v287_v22 = vadd.s32 4294967169, %v151_v21  ;;  %v155_v35 = vor.u32 8388608, %v403_v25 }
  0x8f   :  { %v55_v24 = vsel %vm54_vm0, %v53_v20, 0  ;;  %vm149_vm0 = vcmp.lt.s32.totalorder %v395_v15, 0 }
  0x90   :  { %v56_v26 = vshrl.u32 %v55_v24, 5  ;;  %v57_v27 = vand.u32 31, %v55_v24  ;;  %v157_v28 = vadd.s32 1, %v287_v22 }
  0x92   :  { %v58_v29 = vsub.s32 32, %v57_v27  ;;  %v69_v32 = vshll.u32 %v344_v31, %v57_v27  ;;  %v72_v34 = vshll.u32 %v345_v33, %v57_v27  ;;  %vm158_vm1 = vcmp.gt.s32.totalorder %v157_v28, 0 }
  0x93   :  { %vm78_vm2 = vcmp.lt.s32.totalorder %v56_v26, 4  ;;  %v159_v39 = vsel %vm158_vm1, %v157_v28, 0  ;;  %v60_v42 = vshll.u32 %v347_v41, %v57_v27  ;;  %v63_v49 = vshll.u32 %v348_v43, %v57_v27 }
  0x94   :  { %v70_v36 = vshrl.u32 %v345_v33, %v58_v29  ;;  %v73_v38 = vshrl.u32 %v346_v37, %v58_v29  ;;  %v161_v40 = vand.u32 31, %v159_v39  ;;  %v61_v44 = vshrl.u32 %v348_v43, %v58_v29 }
  0x95   :  { %v64_v46 = vshrl.u32 %v349_v45, %v58_v29  ;;  %v67_v50 = vshrl.u32 %v344_v31, %v58_v29  ;;  %v409_v51 = vshrl.u32 %v159_v39, 5  ;;  %v66_v53 = vshll.u32 %v349_v45, %v57_v27 }
  0x96   :  { %v71_v47 = vor.u32 %v70_v36, %v69_v32  ;;  %v74_v48 = vor.u32 %v73_v38, %v72_v34  ;;  %v162_v52 = vsub.s32 32, %v161_v40  ;;  %vm75_vm3 = vcmp.lt.s32.totalorder %v56_v26, 1 }
  0x97   :  { %v176_v55 = vshll.u32 %v345_v33, %v161_v40  ;;  %v62_v56 = vor.u32 %v61_v44, %v60_v42  ;;  %v65_v57 = vor.u32 %v64_v46, %v63_v49  ;;  %v68_v61 = vor.u32 %v67_v50, %v66_v53 }
  0x98   :  { %v84_v54 = vsel %vm78_vm2, %v71_v47, 920167782  ;;  %v88_v58 = vsel %vm78_vm2, %v74_v48, 1326507024  ;;  %v174_v59 = vshrl.u32 %v345_v33, %v162_v52  ;;  %v177_v60 = vshrl.u32 %v346_v37, %v162_v52 }
  0x99   :  { %v173_v62 = vshll.u32 %v344_v31, %v161_v40  ;;  %v59_v63 = vshrl.u32 %v347_v41, %v58_v29  ;;  %vm77_vm4 = vcmp.lt.s32.totalorder %v56_v26, 3  ;;  %v83_v0 = vsel %vm75_vm3, %v62_v56, %v65_v57 }
  0x9a   :  { %v178_v1 = vor.u32 %v177_v60, %v176_v55  ;;  %vm76_vm5 = vcmp.lt.s32.totalorder %v56_v26, 2  ;;  %v80_v2 = vsel %vm78_vm2, %v68_v61, 2102212464  ;;  %v85_v3 = vsel %vm77_vm4, %v68_v61, %v84_v54 }
  0x9b   :  { %vm182_vm6 = vcmp.lt.s32.totalorder %v409_v51, 4  ;;  %v86_v4 = vsel %vm76_vm5, %v83_v0, %v85_v3  ;;  %v87_v5 = vsel %vm75_vm3, %v65_v57, %v68_v61  ;;  %v89_v6 = vsel %vm77_vm4, %v71_v47, %v88_v58 }
  0x9c   :  { %v175_v7 = vor.u32 %v174_v59, %v173_v62  ;;  %v79_v8 = vsel %vm75_vm3, %v59_v63, %v62_v56  ;;  %v81_v10 = vsel %vm77_vm4, %v65_v57, %v80_v2  ;;  %v90_v11 = vsel %vm76_vm5, %v87_v5, %v89_v6 }
  0x9d   :  { %v422_v12 = vmul.u32.u64.low %v405_v30, %v90_v11  ;;  %v423_v14 = vmul.u32.u64.high %v405_v30, %v90_v11, %v422_v12  ;;  %v426_v16 = vmul.u32.u64.low %v405_v30, %v86_v4  ;;  %v427_v17 = vmul.u32.u64.high %v405_v30, %v86_v4, %v426_v16 }
  0x9e   :  { %v192_v18 = vsel %vm182_vm6, %v178_v1, 1326507024  ;;  %v164_v20 = vshll.u32 %v347_v41, %v161_v40  ;;  %v165_v21 = vshrl.u32 %v348_v43, %v162_v52  ;;  %v82_v22 = vsel %vm76_vm5, %v79_v8, %v81_v10 }
  0x9f   :  { %v167_v23 = vshll.u32 %v348_v43, %v161_v40  ;;  %v168_v24 = vshrl.u32 %v349_v45, %v162_v52  ;;  %v171_v25 = vshrl.u32 %v344_v31, %v162_v52  ;;  %v188_v27 = vsel %vm182_vm6, %v175_v7, 920167782 }
  0xa0   :  { %v166_v28 = vor.u32 %v165_v21, %v164_v20  ;;  %v170_v29 = vshll.u32 %v349_v45, %v161_v40  ;;  %v195_v32 = vshll.u32 %v155_v35, 8  ;;  %vm100_vm7 = vc.u32 %v423_v14, %v426_v16 }
  0xa1   :  { %v101_v33 = vadd.s32 1, %v427_v17  ;;  %v169_v34 = vor.u32 %v168_v24, %v167_v23  ;;  %vm181_vm8 = vcmp.lt.s32.totalorder %v409_v51, 3  ;;  %v98_v36 = vmul.u32 %v405_v30, %v82_v22 }
  0xa2   :  { %v172_v26 = vor.u32 %v171_v25, %v170_v29  ;;  %vm179_vm9 = vcmp.lt.s32.totalorder %v409_v51, 1  ;;  %v193_v31 = vsel %vm181_vm8, %v175_v7, %v192_v18  ;;  %v163_v38 = vshrl.u32 %v347_v41, %v162_v52 }
  0xa3   :  { %v102_v37 = vsel %vm100_vm7, %v101_v33, %v427_v17  ;;  %vm180_vm10 = vcmp.lt.s32.totalorder %v409_v51, 2  ;;  %v187_v35 = vsel %vm179_vm9, %v166_v28, %v169_v34  ;;  %v99_v4 = vadd.s32 %v426_v16, %v423_v14 }
  0xa4   :  { %v103_v39 = vadd.s32 %v102_v37, %v98_v36  ;;  %v184_v40 = vsel %vm182_vm6, %v172_v26, 2102212464  ;;  %v189_v30 = vsel %vm181_vm8, %v172_v26, %v188_v27  ;;  %v191_v42 = vsel %vm179_vm9, %v169_v34, %v172_v26 }
  0xa5   :  { %v183_v43 = vsel %vm179_vm9, %v163_v38, %v166_v28  ;;  %v190_v44 = vsel %vm180_vm10, %v187_v35, %v189_v30  ;;  %v194_v45 = vsel %vm180_vm10, %v191_v42, %v193_v31  ;;  %v185_v47 = vsel %vm181_vm8, %v169_v34, %v184_v40 }
  0xa6   :  { %v104_v46 = vadd.s32 536870912, %v103_v39  ;;  %v451_v48 = vmul.u32.u64.low %v195_v32, %v194_v45  ;;  %v452_v41 = vmul.u32.u64.high %v195_v32, %v194_v45, %v451_v48  ;;  %v186_v53 = vsel %vm180_vm10, %v183_v43, %v185_v47 }
  0xa7   :  { %v454_v49 = vmul.u32.u64.low %v195_v32, %v190_v44  ;;  %v455_v50 = vmul.u32.u64.high %v195_v32, %v190_v44, %v454_v49  ;;  %v202_v57 = vmul.u32 %v195_v32, %v186_v53  ;;  %vm469_vm1 = vcmp.le.f32.partialorder %v147_v19, 0.7853982 }
  0xa8   :  { %v105_v52 = vshrl.u32 %v104_v46, 30  ;;  %vm135_vm5 = vweird.f32 %v391_v9  ;;  %vm239_vm9 = vweird.f32 %v395_v15 }
  0xa9   :  { %vm204_vm11 = vc.u32 %v452_v41, %v454_v49  ;;  %v205_v55 = vadd.s32 1, %v455_v50  ;;  %v203_v14 = vadd.s32 %v454_v49, %v452_v41 }
  0xaa   :  { %v106_v54 = vshll.u32 %v105_v52, 30  ;;  %v129_v27 = vsub.s32 4, %v105_v52 }
  0xab   :  { %v206_v58 = vsel %vm204_vm11, %v205_v55, %v455_v50 }
  0xac   :  { %v107_v56 = vsub.s32 %v103_v39, %v106_v54  ;;  %v207_v51 = vadd.s32 %v206_v58, %v202_v57  ;;  %v130_v31 = vsel %vm45_vm14, %v129_v27, %v105_v52 }
  0xad   :  { %v132_v39 = vsel %vm44_vm15, 0, %v130_v31 }
  0xae   :  { %v109_v59 = vsub.s32 0, %v107_v56  ;;  %v208_v61 = vadd.s32 536870912, %v207_v51  ;;  %v136_v43 = vadd.s32 3, %v132_v39 }
  0xb0   :  { %v284_v60 = vmin.u32 %v109_v59, %v107_v56  ;;  %v209_v63 = vshrl.u32 %v208_v61, 30  ;;  %v137_v47 = vand.u32 3, %v136_v43  ;;  %v254_v59 = vpop.permute.xlu1 %253 }
  0xb2   :  { %v111_v62 = vclz %v284_v60  ;;  %v210_v1 = vshll.u32 %v209_v63, 30  ;;  %v233_v45 = vsub.s32 4, %v209_v63  ;;  %vm142_vm2 = vcmp.eq.s32.totalorder %v137_v47, 2 }
  0xb3   :  { %vm139_vm3 = vcmp.eq.s32.totalorder %v137_v47, 0  ;;  %vm138_vm4 = vcmp.lt.s32.totalorder %v137_v47, 2 }
  0xb4   :  { %v285_v0 = vadd.s32 4294967294, %v111_v62  ;;  %v211_v3 = vsub.s32 %v207_v51, %v210_v1  ;;  %v234_v41 = vsel %vm149_vm0, %v233_v45, %v209_v63 }
  0xb5   :  { %v236_v55 = vsel %vm469_vm1, 0, %v234_v41 }
  0xb6   :  { %vm286_vm12 = vcmp.lt.s32.totalorder %v285_v0, 0  ;;  %v213_v7 = vsub.s32 0, %v211_v3  ;;  %v240_v58 = vadd.s32 3, %v236_v55 }
  0xb7   :  { %v114_v2 = vsel %vm286_vm12, 0, %v285_v0 }
  0xb8   :  { %v115_v5 = vsub.s32 32, %v114_v2  ;;  %v119_v6 = vsub.s32 4294967266, %v114_v2  ;;  %v116_v8 = vshll.u32 %v107_v56, %v114_v2  ;;  %v288_v12 = vmin.u32 %v213_v7, %v211_v3 }
  0xb9   :  { %v241_v61 = vand.u32 3, %v240_v58 }
  0xba   :  { %v117_v10 = vshrl.u32 %v99_v4, %v115_v5  ;;  %v120_v11 = vadd.s32 127, %v119_v6  ;;  %v215_v20 = vclz %v288_v12  ;;  %v259_v4 = vpop.permute.xlu1 %258 }
  0xbb   :  { %vm246_vm6 = vcmp.eq.s32.totalorder %v241_v61, 2  ;;  %vm243_vm7 = vcmp.eq.s32.totalorder %v241_v61, 0  ;;  %vm242_vm8 = vcmp.lt.s32.totalorder %v241_v61, 2 }
  0xbc   :  { %v118_v17 = vor.u32 %v117_v10, %v116_v8  ;;  %v121_v18 = vshll.u32 %v120_v11, 23  ;;  %v289_v22 = vadd.s32 4294967294, %v215_v20 }
  0xbe   :  { %v122_v21 = vor.u32 4788187, %v121_v18  ;;  %v125_v24 = vcvt.s32.f32 %v118_v17  ;;  %vm290_vm13 = vcmp.lt.s32.totalorder %v289_v22, 0 }
  0xbf   :  { %v218_v28 = vsel %vm290_vm13, 0, %v289_v22 }
  0xc0   :  { %v123_v23 = vand.u32 2147483647, %v122_v21  ;;  %v219_v16 = vsub.s32 32, %v218_v28  ;;  %v223_v29 = vsub.s32 4294967266, %v218_v28  ;;  %v220_v33 = vshll.u32 %v211_v3, %v218_v28 }
  0xc2   :  { %v126_v25 = vmul.f32 %v125_v24, %v123_v23  ;;  %v221_v34 = vshrl.u32 %v203_v14, %v219_v16  ;;  %v224_v36 = vadd.s32 127, %v223_v29 }
  0xc4   :  { %v127_v32 = vxor.u32 2147483648, %v126_v25  ;;  %v222_v38 = vor.u32 %v221_v34, %v220_v33  ;;  %v225_v35 = vshll.u32 %v224_v36, 23 }
  0xc6   :  { %v128_v26 = vsel %vm45_vm14, %v127_v32, %v126_v25  ;;  %v226_v40 = vor.u32 4788187, %v225_v35  ;;  %v229_v42 = vcvt.s32.f32 %v222_v38 }
  0xc7   :  { %v131_v37 = vsel %vm44_vm15, %v391_v9, %v128_v26 }
  0xc8   :  { %311 = vcosq.f32 %v131_v37  ;;  %v227_v30 = vand.u32 2147483647, %v226_v40 }
  0xc9   :  { %313 = vsinq.f32 %v131_v37 }
  0xca   :  { %v230_v44 = vmul.f32 %v229_v42, %v227_v30 }
  0xcc   :  { %v231_v46 = vxor.u32 2147483648, %v230_v44 }
  0xce   :  { %v232_v48 = vsel %vm149_vm0, %v231_v46, %v230_v44 }
  0xcf   :  { %v235_v50 = vsel %vm469_vm1, %v395_v15, %v232_v48 }
  0xd0   :  { %315 = vcosq.f32 %v235_v50 }
  0xd1   :  { %317 = vsinq.f32 %v235_v50 }
  0xd2   :  { %v312_v49 = vpop.eup %311 }
  0xd3   :  { %v314_v52 = vpop.eup %313  ;;  %v143_v53 = vxor.u32 2147483648, %v312_v49 }
  0xd4   :  { %v140_v54 = vxor.u32 2147483648, %v314_v52 }
  0xd5   :  { %v144_v19 = vsel %vm142_vm2, %v143_v53, %v314_v52 }
  0xd6   :  { %v141_v56 = vsel %vm139_vm3, %v312_v49, %v140_v54 }
  0xd7   :  { %v145_v57 = vsel %vm138_vm4, %v141_v56, %v144_v19 }
  0xd8   :  { %v146_v51 = vsel %vm135_vm5, nan, %v145_v57 }
  0xd9   :  { %v261_v60 = vmul.f32 %v254_v59, %v146_v51 }
  0xda   :  { %v316_v62 = vpop.eup %315 }
  0xdb   :  { %263 = vst [vmem:[#allocation2] sm:$0xff] %v261_v60  ;;  %v318_v63 = vpop.eup %317  ;;  %v247_v0 = vxor.u32 2147483648, %v316_v62 }
  0xdc   :  { %v244_v1 = vxor.u32 2147483648, %v318_v63 }
  0xdd   :  { %v248_v2 = vsel %vm246_vm6, %v247_v0, %v318_v63 }
  0xde   :  { %v245_v3 = vsel %vm243_vm7, %v316_v62, %v244_v1 }
  0xdf   :  { %v249_v9 = vsel %vm242_vm8, %v245_v3, %v248_v2 }
  0xe0   :  { %v250_v5 = vsel %vm239_vm9, nan, %v249_v9 }
  0xe1   :  { %v262_v6 = vmul.f32 %v259_v4, %v250_v5 }
  0xe3   :  { %264 = vst [vmem:[#allocation2 + $0x8] sm:$0xff] %v262_v6 }
  0xe4   :  { %330 = shalt.err (!%p327_p4)
}
  0xe5   :  { %s331_s26 = scalar_lea.hbm %s495_s3, 256 }
  0xe6   :  { %p332_p5 = scmp.ne.s32.totalorder %s495_s3, %s331_s26  ;;  %p335_p6 = scmp.lt.u32.totalorder %s331_s26, %s495_s3 }
  0xe8   :  { %p337_p7 = pnand %p335_p6, %p332_p5 }
  0xea   :  { %340 = shalt.err (!%p337_p7)
}
  0xeb   :  { %s351_s4 = smov 128   ;;  %s352_s5 = smov 8  }
  0xec   :  { %276 = dma.vmem_to_hbm [thread:$0]  %s271_s1, 256, %s495_s3, [#allocation3], %s351_s4, %s351_s4, %s352_s5  }
  0xed   :  { %341 = dma.done.wait [#allocation3], 256  }
  0xee   :  { %342 = vsyncadd [#allocation3], 4294967040 }
  0xef   :  { %280 = vsyncpa [#allocation3], 1 }

</bundles_post_ra>
